<compile_context>
chip_gen: v7x
topology: tpu7x:2x2x1
jax: 0.10.0
libtpu: 0.0.40
codegen_flags: <defaults>
</compile_context>

<pallas_src>
import math
import functools

import jax
import jax.numpy as jnp
from jax.experimental import pallas as pl
from jax.experimental.pallas import tpu as pltpu


def _build_pe_table(d_model: int, max_len: int) -> jnp.ndarray:
    """Buffer setup (same math as the PyTorch __init__), plain JAX glue."""
    position = jnp.arange(0, max_len, dtype=jnp.float32)[:, None]          # (max_len, 1)
    div_term = jnp.exp(jnp.arange(0, d_model, 2, dtype=jnp.float32)
                       * (-math.log(10000.0) / d_model))                   # (d_model/2,)
    pe = jnp.zeros((max_len, d_model), dtype=jnp.float32)
    pe = pe.at[:, 0::2].set(jnp.sin(position * div_term))
    pe = pe.at[:, 1::2].set(jnp.cos(position * div_term))
    return pe                                                              # (max_len, d_model)


def _choose_seq_tile(seq_len: int, d_model: int,
                     itemsize: int = 4, target_bytes: int = 2 * 1024 * 1024) -> int:
    """Largest seq tile (multiple of 8, dividing S) with <= ~2 MiB per buffer."""
    if seq_len * d_model * itemsize <= target_bytes:
        return seq_len                      # tiny workload: single block per batch row
    best = None
    for ts in range(8, seq_len + 1, 8):
        if seq_len % ts == 0 and ts * d_model * itemsize <= target_bytes:
            best = ts
    return best if best is not None else seq_len


def _make_pos_enc_kernel(p: float, training: bool, ts: int, seq_len: int, d_model: int):
    """Kernel: out = dropout(x + pe). Purely elementwise (VPU), mem-bound."""
    keep = 1.0 - p
    inv_keep = (1.0 / keep) if keep > 0.0 else 0.0
    # keep element iff bits >= thresh  =>  P(drop) = thresh / 2^32 = p
    thresh = min(int(p * 4294967296.0), 4294967295)

    def kernel(seed_ref, x_ref, pe_ref, o_ref):
        # x_ref block: (1, TS, D); pe_ref block: (TS, D) — broadcast add over batch dim.
        val = x_ref[...] + pe_ref[...]
        if training and p > 0.0:
            b = pl.program_id(0)
            j = pl.program_id(1)
            # Stateless counter-based PRNG: hash of (seed, global element index).
            # Decorrelated across batch rows AND seq tiles; works on TPU and interpreter.
            row = jax.lax.broadcasted_iota(jnp.int32, (1, ts, d_model), 1)
            col = jax.lax.broadcasted_iota(jnp.int32, (1, ts, d_model), 2)
            g_row = row + j * ts                                   # absolute seq position
            flat = (b * seq_len + g_row) * d_model + col           # global element id
            bits = flat.astype(jnp.uint32) * jnp.uint32(0x9E3779B9)
            bits = bits + seed_ref[0].astype(jnp.uint32)
            # murmur3-style integer finalizer (good avalanche, all VPU int ops)
            bits = bits ^ (bits >> jnp.uint32(16))
            bits = bits * jnp.uint32(0x7FEB352D)
            bits = bits ^ (bits >> jnp.uint32(15))
            bits = bits * jnp.uint32(0x846CA68B)
            bits = bits ^ (bits >> jnp.uint32(16))
            # one select + one multiply: mask and 1/(1-p) scale fused
            scale = jnp.where(bits >= jnp.uint32(thresh),
                              jnp.float32(inv_keep), jnp.float32(0.0))
            val = val * scale
        o_ref[...] = val.astype(o_ref.dtype)

    return kernel


@functools.partial(jax.jit, static_argnames=("p", "training"))
def positional_encoding(x, pe_table, seed, *, p: float = 0.1, training: bool = False):
    """x: (B, S, D) float32; pe_table: (max_len, D); seed: int32 array of shape (1,)."""
    B, S, D = x.shape
    ts = _choose_seq_tile(S, D)
    n_seq_tiles = S // ts

    kernel = _make_pos_enc_kernel(p, training, ts, S, D)
    grid_spec = pltpu.PrefetchScalarGridSpec(
        num_scalar_prefetch=1,                     # `seed` lands in SMEM
        grid=(B, n_seq_tiles),
        in_specs=[
            # x: one (batch row, seq tile) block per step
            pl.BlockSpec((1, ts, D), lambda b, j, seed_ref: (b, j, 0)),
            # pe: rows picked straight out of the full table (no wrapper slice copy)
            pl.BlockSpec((ts, D), lambda b, j, seed_ref: (j, 0)),
        ],
        out_specs=pl.BlockSpec((1, ts, D), lambda b, j, seed_ref: (b, j, 0)),
    )
    return pl.pallas_call(
        kernel,
        grid_spec=grid_spec,
        out_shape=jax.ShapeDtypeStruct((B, S, D), x.dtype),
        compiler_params=pltpu.CompilerParams(
            # no reduction axis: both grid dims are independent (megacore-shardable on v7x)
            dimension_semantics=("parallel", "parallel"),
            vmem_limit_bytes=64 * 1024 * 1024,
        ),
    )(seed, x, pe_table)


if __name__ == "__main__":
    # Small shapes consistent with the module's forward: (batch, seq, d_model)
    B, S, D = 2, 8, 32
    MAX_LEN = 5000
    P_DROP = 0.1

    key = jax.random.PRNGKey(0)
    x = jax.random.normal(key, (B, S, D), dtype=jnp.float32)
    pe_table = _build_pe_table(D, MAX_LEN)
    seed = jnp.array([1234], dtype=jnp.int32)

    # Eval-mode (dropout = identity): must match x + pe exactly.
    out_eval = positional_encoding(x, pe_table, seed, p=P_DROP, training=False)
    out_eval = jax.block_until_ready(out_eval)
    ref_eval = x + pe_table[None, :S, :]
    assert out_eval.shape == (B, S, D)
    assert jnp.allclose(out_eval, ref_eval, atol=1e-6), "eval-mode mismatch"

    # Training-mode (stochastic dropout inside the kernel, stateless hash PRNG).
    out_train = positional_encoding(x, pe_table, seed, p=P_DROP, training=True)
    out_train = jax.block_until_ready(out_train)
    # Surviving elements are scaled by 1/(1-p); zeros mark dropped positions.
    nonzero = out_train != 0.0
    scaled_ref = ref_eval / (1.0 - P_DROP)
    assert jnp.allclose(jnp.where(nonzero, out_train, 0.0),
                        jnp.where(nonzero, scaled_ref, 0.0), atol=1e-5), "train-mode scale mismatch"

    print("KERNEL_OK")
</pallas_src>

<mosaic_0001>
module attributes {stable_mosaic.version = 11 : i64} {
  func.func @kernel(%arg0: i32, %arg1: i32, %arg2: memref<1xi32, #tpu.memory_space<smem>>, %arg3: memref<1x8x32xf32, #tpu.memory_space<vmem>>, %arg4: memref<8x32xf32, #tpu.memory_space<vmem>>, %arg5: memref<1x8x32xf32, #tpu.memory_space<vmem>>) attributes {dimension_semantics = [#tpu.dimension_semantics<parallel>, #tpu.dimension_semantics<parallel>], iteration_bounds = array<i64: 2, 1>, scalar_prefetch = 1 : i64, scratch_operands = 0 : i64, tpu.core_type = #tpu.core_type<tc>, window_params = [{transform_indices = @transform_0, window_bounds = array<i64: 1, 8, 32>}, {transform_indices = @transform_1, window_bounds = array<i64: 8, 32>}, {transform_indices = @transform_2, window_bounds = array<i64: 1, 8, 32>}]} {
    %c0 = arith.constant 0 : index
    %c0_0 = arith.constant 0 : index
    %c0_1 = arith.constant 0 : index
    %0 = vector.load %arg3[%c0, %c0_0, %c0_1] : memref<1x8x32xf32, #tpu.memory_space<vmem>>, vector<1x8x32xf32>
    %c0_2 = arith.constant 0 : index
    %c0_3 = arith.constant 0 : index
    %1 = vector.load %arg4[%c0_2, %c0_3] : memref<8x32xf32, #tpu.memory_space<vmem>>, vector<8x32xf32>
    %2 = vector.shape_cast %1 : vector<8x32xf32> to vector<1x8x32xf32>
    %3 = arith.addf %0, %2 : vector<1x8x32xf32>
    %c0_4 = arith.constant 0 : index
    %c0_5 = arith.constant 0 : index
    %c0_6 = arith.constant 0 : index
    %4 = vector.load %arg5[%c0_4, %c0_5, %c0_6] : memref<1x8x32xf32, #tpu.memory_space<vmem>>, vector<1x8x32xf32>
    tpu.vector_store %arg5[%c0_4, %c0_5, %c0_6], %3 {strides = array<i32>} : memref<1x8x32xf32, #tpu.memory_space<vmem>>, vector<1x8x32xf32>,
    return
  }
  func.func @transform_0(%arg0: i32, %arg1: i32, %arg2: memref<1xi32, #tpu.memory_space<smem>>) -> (i32, i32, i32) {
    %c0_i32 = arith.constant 0 : i32
    %c0_i32_0 = arith.constant 0 : i32
    return %arg0, %arg1, %c0_i32 : i32, i32, i32
  }
  func.func @transform_1(%arg0: i32, %arg1: i32, %arg2: memref<1xi32, #tpu.memory_space<smem>>) -> (i32, i32) {
    %c0_i32 = arith.constant 0 : i32
    %c0_i32_0 = arith.constant 0 : i32
    return %arg1, %c0_i32 : i32, i32
  }
  func.func @transform_2(%arg0: i32, %arg1: i32, %arg2: memref<1xi32, #tpu.memory_space<smem>>) -> (i32, i32, i32) {
    %c0_i32 = arith.constant 0 : i32
    %c0_i32_0 = arith.constant 0 : i32
    return %arg0, %arg1, %c0_i32 : i32, i32, i32
  }
}

</mosaic_0001>

<bundles_post_ra>
// kernel: positional_encoding.1
= control target key start
LH: loop header
LB: loop body
LE: loop exit
PB: predicated region body
PF: predicated region fallthrough
CT: control target
= control target key end

     0   :  { %9 = vsyncpa [#allocation5], 0  ;;  %s786_s0 = inlined_call_operand.<no memory space> [shape: s32[1], index: 0, kind: input, shape index: {}]   ;;  %s787_s1 = inlined_call_operand.hbm [shape: f32[2,8,32], index: 1, kind: input, shape index: {}]   ;;  %s788_s2 = inlined_call_operand.hbm [shape: f32[5000,32], index: 2, kind: input, shape index: {}]   ;;  %s789_s3 = inlined_call_operand.hbm [shape: f32[2,8,32], index: 3, kind: output, shape index: {}]  }
   0x1   :  { %11 = vsyncpa [#allocation5 + $0x1], 0 }
   0x2   :  { %12 = vsyncpa [#allocation8], 0 }
   0x3   :  { %13 = vsyncpa [#allocation6], 0 }
   0x4   :  { %15 = vsyncpa [#allocation6 + $0x1], 0  ;;  %s567_s12 = smov 0   ;;  %s569_s13 = smov 0  }
   0x5   :  { %s571_s14 = smov 0   ;;  %s573_s0 = smov 0  }
   0x6   :  { %s575_s15 = smov 0   ;;  %s577_s16 = smov 0  }
   0x7 LB: > { %s310_s17 = sadd.s32 4294967295, %s542_s16   ;;  %s311_s18 = sadd.s32 4294967294, %s542_s16   ;;  %s542_s16 = sphi %s577_s16, %s21_s16   ;;  %s538_s15 = sphi %s575_s15, %s814_s15   ;;  %s534_s0 = sphi %s573_s0, %s813_s0   ;;  %s530_s14 = sphi %s571_s14, %s812_s14   ;;  %s526_s13 = sphi %s569_s13, %s811_s13   ;;  %s522_s12 = sphi %s567_s12, %s810_s12  }
   0x8   : > { %p55_p0 = scmp.ne.s32.totalorder %s526_s13, %s522_s12  ;;  %p601_p1 = scmp.eq.s32.totalorder %s310_s17, 0 }
   0x9   : > { %p605_p2 = scmp.eq.s32.totalorder %s310_s17, 1  ;;  %p113_p3 = scmp.eq.s32.totalorder %s311_s18, 1 }
   0xa   : > { %s794_s19 = scalar_select %p601_p1, 1, 0 }
   0xb   : > { %s795_s20 = scalar_select %p605_p2, 1, 0 }
   0xc   : > { %p611_p4 = por %p601_p1, %p55_p0  ;;  %p312_p5 = scmp.ge.s32.totalorder %s542_s16, 1 }
   0xd   : > { %p616_p6 = por %p113_p3, %p55_p0  ;;  %p120_p7 = scmp.lt.s32.totalorder %s542_s16, 3 }
   0xe   : > { %s796_s21 = scalar_select %p611_p4, 1, 0 }
   0xf   : > { %s797_s22 = scalar_select %p616_p6, 1, 0 }
  0x10   : > { %p621_p8 = pnand %p312_p5, %p120_p7  ;;  %s544_s24 = smov [#allocation7]  }
  0x11   : > { %s135_s25 = sshll.u32 %s544_s24, 4  ;;  %s33_s27 = sadd.s32 1, %s538_s15  ;;  %s136_s25 = int_to_ptr.vmem [resolvable:$true] %s135_s25 }
  0x12   : > { %s798_s23 = scalar_select %p621_p8, 1, 0 }
  0x13   : > { %p333_p10 = pneg %p621_p8  ;;  %s42_s28 = sadd.s32 1, %s530_s14 }
  0x14   : > { %p636_p12 = scmp.ge.s32.totalorder %s33_s27, 2  ;;  %s398_s5 = scalar_lea.hbm %s788_s2, 128 }
  0x15   : > { %p630_p11 = pnand %p333_p10, %p601_p1  ;;  %p399_p13 = scmp.ne.s32.totalorder %s788_s2, %s398_s5 }
  0x16   : > { %s800_s29 = scalar_select %p636_p12, 1, 0 }
  0x17   : > { %p400_p0 = pneg %p630_p11  ;;  %s403_s10 = scalar_lea.hbm %s788_s2, 80000 }
  0x18   : > { %p404_p7 = scmp.lt.u32.totalorder %s403_s10, %s398_s5  ;;  %p405_p10 = scmp.lt.u32.totalorder %s398_s5, %s788_s2 }
  0x19   : > { %p401_p3 = pnand %p400_p0, %p399_p13 }
  0x1a   : > { %p406_p9 = por %p405_p10, %p404_p7 }
  0x1b   : > { %p402_p5 = pneg %p401_p3 }
  0x1d   : > { %p407_p6 = pnand %p406_p9, %p402_p5 }
  0x1f   : > { %410 = shalt.err (!%p407_p6)
}
  0x20   : > { %s411_s18 = scalar_lea.vmem %s136_s25, 128  ;;  %p419_p2 = scmp.lt.s32.totalorder %s136_s25, %s136_s25 }
  0x21   : > { %p412_p1 = scmp.ne.s32.totalorder %s136_s25, %s411_s18  ;;  %p420_p12 = scmp.lt.s32.totalorder %s411_s18, %s411_s18 }
  0x23   : > { %p414_p4 = pnand %p412_p1, %p400_p0  ;;  %p421_p13 = por %p420_p12, %p419_p2 }
  0x25   : > { %p415_p8 = pneg %p414_p4 }
  0x27   : > { %p422_p3 = pnand %p421_p13, %p415_p8 }
  0x29   : > { %425 = shalt.err (!%p422_p3)
}
  0x2a   : > { %336 = dma.hbm_to_vmem [thread:$0]  (!%p630_p11), %s788_s2, 128, %s136_s25, [#allocation8]  }
  0x2b   : > { %p801_p1 = scmp.ne.s32.totalorder %s800_s29, 0  ;;  %p49_p2 = scmp.ne.s32.totalorder %s530_s14, %s526_s13 }
  0x2c   : > { %p50_p4 = scmp.eq.s32.totalorder %s542_s16, 0  ;;  %p346_p6 = scmp.lt.s32.totalorder %s542_s16, 2 }
  0x2d   : > { %s816_s27 = smov (%p801_p1, %s33_s27), 0  ;;  %p802_p12 = scmp.ne.s32.totalorder %s795_s20, 0 }
  0x2e   : > { %s37_s26 = ssub.s32 %s538_s15, %s816_s27  ;;  %p51_p9 = por %p50_p4, %p49_p2 }
  0x2f   : > { %p40_p8 = scmp.eq.s32.totalorder %s37_s26, 0  ;;  %p671_p0 = por %p802_p12, %p49_p2 }
  0x30   : > { %s146_s5 = sand.u32 1, %s530_s14   ;;  %s316_s29 = sshll.u32 %s538_s15, 7 }
  0x31   : > { %s679_s6 = scalar_select %p40_p8, %s530_s14, %s42_s28  }
  0x32   : > { %s315_s25 = sshll.u32 %s146_s5, 3  ;;  %s685_s9 = scalar_lea.hbm %s787_s1, %s316_s29 }
  0x33   : > { %s150_s20 = scalar_lea.vmem [#allocation4], %s315_s25  ;;  %p689_p11 = pnand %p346_p6, %p51_p9 }
  0x34   : > { %s158_s10 = sshll.u32 %s150_s20, 4  ;;  %s147_s28 = scalar_lea.sflag [#allocation5], %s146_s5  ;;  %s687_s10 = int_to_ptr.vmem [resolvable:$true] %s158_s10 }
  0x35   : > { %s426_s17 = scalar_lea.hbm %s685_s9, 128  ;;  %p428_p7 = pneg %p689_p11 }
  0x36   : > { %p427_p5 = scmp.ne.s32.totalorder %s685_s9, %s426_s17  ;;  %s431_s30 = scalar_lea.hbm %s787_s1, 256 }
  0x37   : > { %p432_p3 = scmp.lt.u32.totalorder %s685_s9, %s787_s1  ;;  %p433_p1 = scmp.lt.u32.totalorder %s431_s30, %s426_s17 }
  0x38   : > { %p429_p10 = pnand %p428_p7, %p427_p5  ;;  %p435_p4 = scmp.lt.u32.totalorder %s426_s17, %s685_s9 }
  0x39   : > { %p434_p2 = por %p433_p1, %p432_p3 }
  0x3a   : > { %p430_p13 = pneg %p429_p10 }
  0x3b   : > { %p436_p6 = por %p435_p4, %p434_p2 }
  0x3d   : > { %p437_p8 = pnand %p436_p6, %p430_p13 }
  0x3f   : > { %440 = shalt.err (!%p437_p8)
}
  0x40   : > { %s441_s5 = scalar_lea.vmem %s687_s10, 128  ;;  %s545_s29 = smov [#allocation4]  }
  0x41   : > { %p442_p9 = scmp.ne.s32.totalorder %s687_s10, %s441_s5  ;;  %s446_s7 = sshll.u32 %s545_s29, 4  ;;  %s447_s7 = int_to_ptr.vmem [resolvable:$false] %s446_s7 }
  0x42   : > { %s448_s8 = scalar_lea.vmem %s447_s7, 256  ;;  %p449_p10 = scmp.lt.s32.totalorder %s687_s10, %s447_s7 }
  0x43   : > { %p444_p12 = pnand %p442_p9, %p428_p7  ;;  %p450_p3 = scmp.lt.s32.totalorder %s448_s8, %s441_s5 }
  0x45   : > { %p445_p5 = pneg %p444_p12  ;;  %p451_p1 = por %p450_p3, %p449_p10 }
  0x47   : > { %p452_p2 = pnand %p451_p1, %p445_p5 }
  0x49   : > { %455 = shalt.err (!%p452_p2)
}
  0x4a   : > { %340 = dma.hbm_to_vmem [thread:$0]  (!%p689_p11), %s685_s9, 128, %s687_s10, %s147_s28  }
  0x4b   : > { %p805_p13 = scmp.ne.s32.totalorder %s798_s23, 0 }
  0x4c   : > { %s721_s20 = sand.u32 (!%p805_p13), 1, %s526_s13   ;;  %p806_p7 = scmp.ne.s32.totalorder (!%p805_p13), %s796_s21, 0 }
  0x4d   : > { %167 = sbr.rel (%p805_p13) target bundleno = 113 (0x71), region = 28  ;;  %s318_s17 = sshll.u32 (!%p805_p13), %s721_s20, 3 }
  0x4e   : > { %s170_s18 = scalar_lea.sflag (!%p805_p13), [#allocation5], %s721_s20  ;;  %s173_s24 = scalar_lea.vmem (!%p805_p13), [#allocation4], %s318_s17 }
  0x54   : > { %509 = dma.done.wait (%p806_p7), %s170_s18, 128  }
  0x55   : > { %511 = vsyncadd (%p806_p7), %s170_s18, 4294967168  ;;  %p807_p4 = scmp.ne.s32.totalorder %s794_s19, 0 }
  0x57   : > { %513 = dma.done.wait (%p807_p4), [#allocation8], 128  }
  0x58   : > { %515 = vsyncadd (%p807_p4), [#allocation8], 4294967168  ;;  %s197_s23 = scalar_lea.vmem [#allocation9], %s318_s17  ;;  %s322_s10 = sshll.u32 %s534_s0, 7  ;;  %v198_v0 = vld [vmem:[%s173_s24] sm:$0xff]  ;;  %v199_v1 = vld [vmem:[#allocation7] sm:$0xff] }
  0x59   : > { %s218_s9 = sshll.u32 %s197_s23, 4  ;;  %vm201_vm0 = vcmask 261120   ;;  %v200_v2 = vadd.f32 %v199_v1, %v198_v0  ;;  %s739_s19 = scalar_lea.hbm %s789_s3, %s322_s10  ;;  %s734_s9 = int_to_ptr.vmem [resolvable:$true] %s218_s9 }
  0x5a   : > { %s204_s28 = scalar_lea.sflag [#allocation6], %s721_s20  ;;  %s456_s30 = scalar_lea.vmem %s734_s9, 128 }
  0x5b   : > { %202 = vst.msk [vmem:[%s197_s23] sm:$0xff] %vm201_vm0, %v200_v2  ;;  %p457_p11 = scmp.ne.s32.totalorder %s734_s9, %s456_s30  ;;  %s546_s0 = smov [#allocation9]  }
  0x5c   : > { %s460_s26 = sshll.u32 %s546_s0, 4  ;;  %s461_s26 = int_to_ptr.vmem [resolvable:$false] %s460_s26 }
  0x5d   : > { %p458_p6 = pnand %p457_p11, %p671_p0  ;;  %s462_s25 = scalar_lea.vmem %s461_s26, 256 }
  0x5e   : > { %p463_p9 = scmp.lt.s32.totalorder %s734_s9, %s461_s26  ;;  %p464_p12 = scmp.lt.s32.totalorder %s462_s25, %s456_s30 }
  0x5f   : > { %p459_p8 = pneg %p458_p6 }
  0x60   : > { %p465_p5 = por %p464_p12, %p463_p9 }
  0x62   : > { %p466_p10 = pnand %p465_p5, %p459_p8 }
  0x64   : > { %469 = shalt.err (!%p466_p10)
}
  0x65   : > { %s470_s5 = scalar_lea.hbm %s739_s19, 128  ;;  %s474_s8 = scalar_lea.hbm %s789_s3, 256 }
  0x66   : > { %p471_p3 = scmp.ne.s32.totalorder %s739_s19, %s470_s5  ;;  %p475_p13 = scmp.lt.u32.totalorder %s739_s19, %s789_s3 }
  0x67   : > { %p476_p7 = scmp.lt.u32.totalorder %s474_s8, %s470_s5  ;;  %p478_p11 = scmp.lt.u32.totalorder %s470_s5, %s739_s19 }
  0x68   : > { %p472_p1 = pnand %p471_p3, %p671_p0 }
  0x69   : > { %p477_p4 = por %p476_p7, %p475_p13 }
  0x6a   : > { %p473_p2 = pneg %p472_p1 }
  0x6b   : > { %p479_p6 = por %p478_p11, %p477_p4 }
  0x6d   : > { %p480_p8 = pnand %p479_p6, %p473_p2 }
  0x6f   : > { %483 = shalt.err (!%p480_p8)
}
  0x70   : > { %331 = dma.vmem_to_hbm [thread:$0]  (%p671_p0), %s734_s9, 128, %s739_s19, %s204_s28  }
  0x71 PF: > { %s230_s18 = sand.u32 1, %s522_s12   ;;  %p808_p9 = scmp.ne.s32.totalorder %s797_s22, 0 }
  0x72   : > { %p809_p12 = scmp.ge.s32.totalorder %s542_s16, 2  ;;  %s231_s24 = scalar_lea.sflag [#allocation6], %s230_s18 }
  0x74   : > { %p342_p5 = pnand %p809_p12, %p808_p9 }
  0x76   : > { %517 = dma.done.wait (!%p342_p5), %s231_s24, 128  }
  0x77   : > { %519 = vsyncadd (!%p342_p5), %s231_s24, 4294967168  ;;  %s21_s16 = sadd.s32 1, %s542_s16   ;;  %s810_s12 = smov %s526_s13 }
  0x78   : > { %p18_p10 = scmp.ge.s32.totalorder %s21_s16, 4   ;;  %s811_s13 = smov %s530_s14 }
  0x79   : > { %s812_s14 = smov %s679_s6  ;;  %s813_s0 = smov %s538_s15 }
  0x7a   : > { %s814_s15 = smov %s816_s27  ;;  %20 = sbr.rel (!%p18_p10) target bundleno = 7 (0x7), region = 78 }
  0x81   :  { %236 = vsyncpa [#allocation5], 1 }
  0x82   :  { %238 = vsyncpa [#allocation5 + $0x1], 1 }
  0x83   :  { %239 = vsyncpa [#allocation8], 1 }
  0x84   :  { %240 = vsyncpa [#allocation6], 1 }
  0x85   :  { %242 = vsyncpa [#allocation6 + $0x1], 1 }

</bundles_post_ra>
